<compile_context>
chip_gen: v6e
topology: v6e:2x2x1
jax: 0.10.0
libtpu: 0.0.40
codegen_flags: <defaults>
</compile_context>

<pallas_src>
import functools

import jax
import jax.numpy as jnp
from jax import lax
from jax.experimental import pallas as pl
from jax.experimental.pallas import tpu as pltpu

_TWO_PI = 6.283185307179586


def _mix32(v):
    """splitmix32-style avalanche on uint32 (works on scalars and vectors)."""
    v = v ^ (v >> 16)
    v = v * jnp.uint32(0x7FEB352D)
    v = v ^ (v >> 15)
    v = v * jnp.uint32(0x846CA68B)
    v = v ^ (v >> 16)
    return v


def _bits_to_1_2(bits):
    """uint32 random bits -> float32 uniform in [1, 2) via the exponent trick."""
    return lax.bitcast_convert_type((bits >> 9) | jnp.uint32(0x3F800000),
                                    jnp.float32)


def _gaussian_noise_kernel(seed_ref, x_ref, o_ref, *, mean, std):
    tile_rows, lane = x_ref.shape
    half = lane // 2  # lane is a multiple of 256 -> half is 128-aligned

    i = pl.program_id(0)

    # Global per-pair counter (each counter yields TWO normals via both
    # Box-Muller outputs).  program_id is folded in so every tile / core gets a
    # distinct stream.
    row = lax.broadcasted_iota(jnp.int32, (tile_rows, half), 0)
    col = lax.broadcasted_iota(jnp.int32, (tile_rows, half), 1)
    g_row = i * tile_rows + row
    counter = (g_row * half + col).astype(jnp.uint32)

    # Two decorrelated keyed streams derived from the scalar seed (SMEM).
    s = seed_ref[0].astype(jnp.uint32)
    k1 = _mix32(s ^ jnp.uint32(0x9E3779B9))
    k2 = _mix32(s + jnp.uint32(0x7F4A7C15))
    bits1 = _mix32(counter * jnp.uint32(0x9E3779B9) + k1)
    bits2 = _mix32(counter * jnp.uint32(0x85EBCA77) + k2)

    # Uniforms: f1 in [1,2) -> u1 = 2 - f1 in (0,1]  (log-safe, no clamp needed).
    u1 = jnp.float32(2.0) - _bits_to_1_2(bits1)
    theta = (_bits_to_1_2(bits2) - jnp.float32(1.0)) * jnp.float32(_TWO_PI)

    # Box-Muller: use BOTH outputs (cos for the left half-lanes, sin for the
    # right half-lanes) -> halves RNG + transcendental work per element.
    r = jnp.sqrt(jnp.float32(-2.0) * jnp.log(u1))
    mean_f = jnp.float32(mean)
    std_f = jnp.float32(std)
    n0 = mean_f + std_f * (r * jnp.cos(theta))
    n1 = mean_f + std_f * (r * jnp.sin(theta))

    o_ref[:, :half] = (x_ref[:, :half].astype(jnp.float32) + n0).astype(o_ref.dtype)
    o_ref[:, half:] = (x_ref[:, half:].astype(jnp.float32) + n1).astype(o_ref.dtype)


def gaussian_noise_layer(x, seed, *, mean=0.0, std=0.2, training=True):
    """Pallas implementation of GaussianNoiseLayer.forward.

    x: any-shape array (e.g. NCHW activations).
    seed: python int or int32 scalar; callers should supply a fresh seed per
          training step (same seed -> same noise, by construction).
    """
    if not training:
        return x

    orig_shape = x.shape
    orig_dtype = x.dtype
    total = int(x.size)

    # Lane-dense slab: 512 lanes (multiple of 256 so the half-lane split stays
    # 128-aligned), up to 512 rows per block -> 1 MiB f32 blocks; in + out,
    # double-buffered = 4 MiB, comfortably under the v5e 16 MiB scoped VMEM.
    LANE = 512
    MAX_TILE_ROWS = 512

    rows = pl.cdiv(total, LANE)
    rows8 = ((rows + 7) // 8) * 8                      # sublane-align
    tile_rows = min(MAX_TILE_ROWS, rows8)              # multiple of 8
    rows_pad = ((rows8 + tile_rows - 1) // tile_rows) * tile_rows
    padded_total = rows_pad * LANE

    xf = x.reshape(-1)
    if padded_total != total:
        xf = jnp.pad(xf, (0, padded_total - total))
    x2 = xf.reshape(rows_pad, LANE)

    grid = (rows_pad // tile_rows,)
    seed_arr = jnp.asarray(seed, dtype=jnp.int32).reshape(1)

    kernel = functools.partial(_gaussian_noise_kernel,
                               mean=float(mean), std=float(std))

    out2 = pl.pallas_call(
        kernel,
        out_shape=jax.ShapeDtypeStruct((rows_pad, LANE), orig_dtype),
        grid_spec=pltpu.PrefetchScalarGridSpec(
            num_scalar_prefetch=1,
            grid=grid,
            # index_maps receive the prefetched seed ref as trailing arg.
            in_specs=[pl.BlockSpec((tile_rows, LANE), lambda i, seed_ref: (i, 0))],
            out_specs=pl.BlockSpec((tile_rows, LANE), lambda i, seed_ref: (i, 0)),
        ),
        # operand 0 is the prefetched seed, operand 1 is x2 -> write in place.
        input_output_aliases={1: 0},
        compiler_params=pltpu.CompilerParams(
            dimension_semantics=("parallel",),   # megacore sharding on v7x
        ),
    )(seed_arr, x2)

    return out2.reshape(-1)[:total].reshape(orig_shape)


if __name__ == "__main__":
    key = jax.random.PRNGKey(0)
    # Small NCHW input consistent with the conv-style module.
    x = jax.random.normal(key, (2, 4, 16, 16), dtype=jnp.float32)

    y = gaussian_noise_layer(x, seed=42, mean=0.0, std=0.2, training=True)
    y = jax.block_until_ready(y)

    assert y.shape == x.shape and y.dtype == x.dtype

    diff = y - x
    d_std = float(jnp.std(diff))
    d_mean = float(jnp.mean(diff))
    assert float(jnp.max(jnp.abs(diff))) > 0.0          # noise was added
    assert 0.10 < d_std < 0.35, d_std                    # ~N(0, 0.2), loose bound
    assert abs(d_mean) < 0.05, d_mean

    # Different seed -> different noise.
    y2 = gaussian_noise_layer(x, seed=7, mean=0.0, std=0.2, training=True)
    assert float(jnp.max(jnp.abs(y2 - y))) > 0.0

    # Eval mode is identity (no kernel launched).
    y_eval = gaussian_noise_layer(x, seed=42, training=False)
    assert bool(jnp.all(y_eval == x))

    print("KERNEL_OK")
</pallas_src>

<mosaic_0001>
module attributes {stable_mosaic.version = 11 : i64} {
  func.func @_gaussian_noise_kernel(%arg0: i32, %arg1: memref<1xi32, #tpu.memory_space<smem>>, %arg2: memref<8x512xf32, #tpu.memory_space<vmem>>, %arg3: memref<8x512xf32, #tpu.memory_space<vmem>>) attributes {dimension_semantics = [#tpu.dimension_semantics<parallel>], iteration_bounds = array<i64: 1>, scalar_prefetch = 1 : i64, scratch_operands = 0 : i64, tpu.core_type = #tpu.core_type<tc>, window_params = [{transform_indices = @transform_0, window_bounds = array<i64: 8, 512>}, {transform_indices = @transform_1, window_bounds = array<i64: 8, 512>}]} {
    %0 = tpu.iota {dimensions = array<i32: 0>} : vector<8x256xi32>
    %1 = tpu.iota {dimensions = array<i32: 1>} : vector<8x256xi32>
    %c8_i32 = arith.constant 8 : i32
    %2 = arith.muli %arg0, %c8_i32 : i32
    %3 = vector.broadcast %2 : i32 to vector<8x256xi32>
    %4 = arith.addi %3, %0 : vector<8x256xi32>
    %c256_i32 = arith.constant 256 : i32
    %5 = vector.broadcast %c256_i32 : i32 to vector<8x256xi32>
    %6 = arith.muli %4, %5 : vector<8x256xi32>
    %7 = arith.addi %6, %1 : vector<8x256xi32>
    %c0 = arith.constant 0 : index
    %8 = memref.load %arg1[%c0] : memref<1xi32, #tpu.memory_space<smem>>
    %c-1640531527_i32 = arith.constant -1640531527 : i32
    %9 = arith.xori %8, %c-1640531527_i32 : i32
    %c16_i32 = arith.constant 16 : i32
    %10 = arith.shrui %9, %c16_i32 : i32
    %11 = arith.xori %9, %10 : i32
    %c2146121005_i32 = arith.constant 2146121005 : i32
    %12 = arith.muli %11, %c2146121005_i32 : i32
    %c15_i32 = arith.constant 15 : i32
    %13 = arith.shrui %12, %c15_i32 : i32
    %14 = arith.xori %12, %13 : i32
    %c-2073254261_i32 = arith.constant -2073254261 : i32
    %15 = arith.muli %14, %c-2073254261_i32 : i32
    %c16_i32_0 = arith.constant 16 : i32
    %16 = arith.shrui %15, %c16_i32_0 : i32
    %17 = arith.xori %15, %16 : i32
    %c2135587861_i32 = arith.constant 2135587861 : i32
    %18 = arith.addi %8, %c2135587861_i32 : i32
    %c16_i32_1 = arith.constant 16 : i32
    %19 = arith.shrui %18, %c16_i32_1 : i32
    %20 = arith.xori %18, %19 : i32
    %c2146121005_i32_2 = arith.constant 2146121005 : i32
    %21 = arith.muli %20, %c2146121005_i32_2 : i32
    %c15_i32_3 = arith.constant 15 : i32
    %22 = arith.shrui %21, %c15_i32_3 : i32
    %23 = arith.xori %21, %22 : i32
    %c-2073254261_i32_4 = arith.constant -2073254261 : i32
    %24 = arith.muli %23, %c-2073254261_i32_4 : i32
    %c16_i32_5 = arith.constant 16 : i32
    %25 = arith.shrui %24, %c16_i32_5 : i32
    %26 = arith.xori %24, %25 : i32
    %c-1640531527_i32_6 = arith.constant -1640531527 : i32
    %27 = vector.broadcast %c-1640531527_i32_6 : i32 to vector<8x256xi32>
    %28 = arith.muli %7, %27 : vector<8x256xi32>
    %29 = vector.broadcast %17 : i32 to vector<8x256xi32>
    %30 = arith.addi %28, %29 : vector<8x256xi32>
    %c16_i32_7 = arith.constant 16 : i32
    %31 = vector.broadcast %c16_i32_7 : i32 to vector<8x256xi32>
    %32 = arith.shrui %30, %31 : vector<8x256xi32>
    %33 = arith.xori %30, %32 : vector<8x256xi32>
    %c2146121005_i32_8 = arith.constant 2146121005 : i32
    %34 = vector.broadcast %c2146121005_i32_8 : i32 to vector<8x256xi32>
    %35 = arith.muli %33, %34 : vector<8x256xi32>
    %c15_i32_9 = arith.constant 15 : i32
    %36 = vector.broadcast %c15_i32_9 : i32 to vector<8x256xi32>
    %37 = arith.shrui %35, %36 : vector<8x256xi32>
    %38 = arith.xori %35, %37 : vector<8x256xi32>
    %c-2073254261_i32_10 = arith.constant -2073254261 : i32
    %39 = vector.broadcast %c-2073254261_i32_10 : i32 to vector<8x256xi32>
    %40 = arith.muli %38, %39 : vector<8x256xi32>
    %c16_i32_11 = arith.constant 16 : i32
    %41 = vector.broadcast %c16_i32_11 : i32 to vector<8x256xi32>
    %42 = arith.shrui %40, %41 : vector<8x256xi32>
    %43 = arith.xori %40, %42 : vector<8x256xi32>
    %c-2048144777_i32 = arith.constant -2048144777 : i32
    %44 = vector.broadcast %c-2048144777_i32 : i32 to vector<8x256xi32>
    %45 = arith.muli %7, %44 : vector<8x256xi32>
    %46 = vector.broadcast %26 : i32 to vector<8x256xi32>
    %47 = arith.addi %45, %46 : vector<8x256xi32>
    %c16_i32_12 = arith.constant 16 : i32
    %48 = vector.broadcast %c16_i32_12 : i32 to vector<8x256xi32>
    %49 = arith.shrui %47, %48 : vector<8x256xi32>
    %50 = arith.xori %47, %49 : vector<8x256xi32>
    %c2146121005_i32_13 = arith.constant 2146121005 : i32
    %51 = vector.broadcast %c2146121005_i32_13 : i32 to vector<8x256xi32>
    %52 = arith.muli %50, %51 : vector<8x256xi32>
    %c15_i32_14 = arith.constant 15 : i32
    %53 = vector.broadcast %c15_i32_14 : i32 to vector<8x256xi32>
    %54 = arith.shrui %52, %53 : vector<8x256xi32>
    %55 = arith.xori %52, %54 : vector<8x256xi32>
    %c-2073254261_i32_15 = arith.constant -2073254261 : i32
    %56 = vector.broadcast %c-2073254261_i32_15 : i32 to vector<8x256xi32>
    %57 = arith.muli %55, %56 : vector<8x256xi32>
    %c16_i32_16 = arith.constant 16 : i32
    %58 = vector.broadcast %c16_i32_16 : i32 to vector<8x256xi32>
    %59 = arith.shrui %57, %58 : vector<8x256xi32>
    %60 = arith.xori %57, %59 : vector<8x256xi32>
    %c9_i32 = arith.constant 9 : i32
    %61 = vector.broadcast %c9_i32 : i32 to vector<8x256xi32>
    %62 = arith.shrui %43, %61 : vector<8x256xi32>
    %c1065353216_i32 = arith.constant 1065353216 : i32
    %63 = vector.broadcast %c1065353216_i32 : i32 to vector<8x256xi32>
    %64 = arith.ori %62, %63 : vector<8x256xi32>
    %65 = tpu.bitcast %64 : vector<8x256xi32> -> vector<8x256xf32>
    %cst = arith.constant 2.000000e+00 : f32
    %66 = vector.broadcast %cst : f32 to vector<8x256xf32>
    %67 = arith.subf %66, %65 : vector<8x256xf32>
    %c9_i32_17 = arith.constant 9 : i32
    %68 = vector.broadcast %c9_i32_17 : i32 to vector<8x256xi32>
    %69 = arith.shrui %60, %68 : vector<8x256xi32>
    %c1065353216_i32_18 = arith.constant 1065353216 : i32
    %70 = vector.broadcast %c1065353216_i32_18 : i32 to vector<8x256xi32>
    %71 = arith.ori %69, %70 : vector<8x256xi32>
    %72 = tpu.bitcast %71 : vector<8x256xi32> -> vector<8x256xf32>
    %cst_19 = arith.constant 1.000000e+00 : f32
    %73 = vector.broadcast %cst_19 : f32 to vector<8x256xf32>
    %74 = arith.subf %72, %73 : vector<8x256xf32>
    %cst_20 = arith.constant 6.28318548 : f32
    %75 = vector.broadcast %cst_20 : f32 to vector<8x256xf32>
    %76 = arith.mulf %74, %75 : vector<8x256xf32>
    %77 = math.log %67 : vector<8x256xf32>
    %cst_21 = arith.constant -2.000000e+00 : f32
    %78 = vector.broadcast %cst_21 : f32 to vector<8x256xf32>
    %79 = arith.mulf %78, %77 : vector<8x256xf32>
    %80 = math.sqrt %79 : vector<8x256xf32>
    %81 = math.cos %76 : vector<8x256xf32>
    %82 = arith.mulf %80, %81 : vector<8x256xf32>
    %cst_22 = arith.constant 2.000000e-01 : f32
    %83 = vector.broadcast %cst_22 : f32 to vector<8x256xf32>
    %84 = arith.mulf %83, %82 : vector<8x256xf32>
    %cst_23 = arith.constant 0.000000e+00 : f32
    %85 = vector.broadcast %cst_23 : f32 to vector<8x256xf32>
    %86 = arith.addf %85, %84 : vector<8x256xf32>
    %87 = math.sin %76 : vector<8x256xf32>
    %88 = arith.mulf %80, %87 : vector<8x256xf32>
    %cst_24 = arith.constant 2.000000e-01 : f32
    %89 = vector.broadcast %cst_24 : f32 to vector<8x256xf32>
    %90 = arith.mulf %89, %88 : vector<8x256xf32>
    %cst_25 = arith.constant 0.000000e+00 : f32
    %91 = vector.broadcast %cst_25 : f32 to vector<8x256xf32>
    %92 = arith.addf %91, %90 : vector<8x256xf32>
    %c0_26 = arith.constant 0 : index
    %c0_27 = arith.constant 0 : index
    %93 = vector.load %arg2[%c0_26, %c0_27] : memref<8x512xf32, #tpu.memory_space<vmem>>, vector<8x256xf32>
    %94 = arith.addf %93, %86 : vector<8x256xf32>
    %c0_28 = arith.constant 0 : index
    %c0_29 = arith.constant 0 : index
    %95 = vector.load %arg3[%c0_28, %c0_29] : memref<8x512xf32, #tpu.memory_space<vmem>>, vector<8x256xf32>
    tpu.vector_store %arg3[%c0_28, %c0_29], %94 {strides = array<i32>} : memref<8x512xf32, #tpu.memory_space<vmem>>, vector<8x256xf32>,
    %c0_30 = arith.constant 0 : index
    %c256 = arith.constant 256 : index
    %96 = vector.load %arg2[%c0_30, %c256] : memref<8x512xf32, #tpu.memory_space<vmem>>, vector<8x256xf32>
    %97 = arith.addf %96, %92 : vector<8x256xf32>
    %c0_31 = arith.constant 0 : index
    %c256_32 = arith.constant 256 : index
    %98 = vector.load %arg3[%c0_31, %c256_32] : memref<8x512xf32, #tpu.memory_space<vmem>>, vector<8x256xf32>
    tpu.vector_store %arg3[%c0_31, %c256_32], %97 {strides = array<i32>} : memref<8x512xf32, #tpu.memory_space<vmem>>, vector<8x256xf32>,
    return
  }
  func.func @transform_0(%arg0: i32, %arg1: memref<1xi32, #tpu.memory_space<smem>>) -> (i32, i32) {
    %c0_i32 = arith.constant 0 : i32
    %c0_i32_0 = arith.constant 0 : i32
    return %arg0, %c0_i32 : i32, i32
  }
  func.func @transform_1(%arg0: i32, %arg1: memref<1xi32, #tpu.memory_space<smem>>) -> (i32, i32) {
    %c0_i32 = arith.constant 0 : i32
    %c0_i32_0 = arith.constant 0 : i32
    return %arg0, %c0_i32 : i32, i32
  }
}

</mosaic_0001>

<bundles_post_ra>
// kernel: tpu_custom_call.1
= control target key start
LH: loop header
LB: loop body
LE: loop exit
PB: predicated region body
PF: predicated region fallthrough
CT: control target
= control target key end

     0   :  { %8 = vsyncpa [#allocation5], 0  ;;  %s830_s0 = inlined_call_operand.<no memory space> [shape: s32[1], index: 0, kind: input, shape index: {}]   ;;  %s831_s1 = inlined_call_operand.hbm [shape: f32[8,512], index: 1, kind: input, shape index: {}, may-alias: {1,2}]   ;;  %s832_s2 = inlined_call_operand.hbm [shape: f32[8,512], index: 2, kind: output, shape index: {}, may-alias: {1,2}]  }
   0x1   :  { %9 = vsyncpa [#allocation6], 0  ;;  %s680_s9 = smov [#allocation4]  }
   0x2   :  { %s16_s10 = sshll.u32 %s680_s9, 4  ;;  %s17_s10 = int_to_ptr.vmem [resolvable:$true] %s16_s10 }
   0x3   :  { %s644_s11 = scalar_lea.vmem %s17_s10, 512  ;;  %p649_p1 = scmp.lt.s32.totalorder %s17_s10, %s17_s10 }
   0x4   :  { %p645_p0 = scmp.ne.s32.totalorder %s17_s10, %s644_s11  ;;  %p650_p2 = scmp.lt.s32.totalorder %s644_s11, %s644_s11 }
   0x6   :  { %p651_p3 = por %p650_p2, %p649_p1 }
   0x8   :  { %p652_p4 = pnand %p651_p3, %p645_p0 }
   0xa   :  { %655 = shalt.err (!%p652_p4)
}
   0xb   :  { %19 = dma.hbm_to_vmem [thread:$0]  %s831_s1, 512, %s17_s10, [#allocation5]  }
   0xc   :  { %676 = dma.done.wait [#allocation5], 512  }
   0xd   :  { %677 = vsyncadd [#allocation5], 4294966784  ;;  %v23_v0 = vlaneseq  ;;  %s35_s16 = sxor.u32 2654435769, %s830_s0  ;;  %s44_s19 = sadd.s32 2135587861, %s830_s0 }
   0xe   :  { %s36_s20 = sshrl.u32 %s35_s16, 16  ;;  %s45_s21 = sshrl.u32 %s44_s19, 16 }
   0xf   :  { %v24_v1 = vshrl.u32 %v23_v0, 7  ;;  %v26_v2 = vand.u32 127, %v23_v0  ;;  %s37_s22 = sxor.u32 %s36_s20, %s35_s16  ;;  %s46_s23 = sxor.u32 %s45_s21, %s44_s19 }
  0x10   :  { %s38_s24 = smul.u32 2146121005, %s37_s22  ;;  %s687_s6 = smov [#allocation7]  }
  0x11   :  { %v31_v3 = vmul.u32 256, %v24_v1  ;;  %s47_s1 = smul.u32 2146121005, %s46_s23  ;;  %v27_v4 = vadd.s32 128, %v26_v2  ;;  %s577_s7 = sshll.u32 %s687_s6, 4  ;;  %s578_s7 = int_to_ptr.vmem [resolvable:$true] %s577_s7 }
  0x12   :  { %s39_s25 = sshrl.u32 %s38_s24, 15  ;;  %s656_s8 = scalar_lea.vmem %s578_s7, 512 }
  0x13   :  { %v32_v5 = vadd.s32 %v31_v3, %v26_v2  ;;  %s40_s26 = sxor.u32 %s39_s25, %s38_s24  ;;  %s48_s27 = sshrl.u32 %s47_s1, 15  ;;  %v33_v6 = vadd.s32 %v31_v3, %v27_v4  ;;  %v681_v4 = vmov 683565275  }
  0x14   :  { %s41_s28 = smul.u32 2221713035, %s40_s26  ;;  %s49_s29 = sxor.u32 %s48_s27, %s47_s1 }
  0x15   :  { %s50_s30 = smul.u32 2221713035, %s49_s29  ;;  %v74_v7 = vmul.u32 2246822519, %v32_v5  ;;  %v75_v8 = vmul.u32 2246822519, %v33_v6  ;;  %p657_p5 = scmp.ne.s32.totalorder %s578_s7, %s656_s8 }
  0x16   :  { %s42_s3 = sshrl.u32 %s41_s28, 16  ;;  %v53_v14 = vmul.u32 2654435769, %v32_v5  ;;  %v54_v24 = vmul.u32 2654435769, %v33_v6  ;;  %p661_p6 = scmp.lt.s32.totalorder %s578_s7, %s578_s7 }
  0x17   :  { %s51_s0 = sshrl.u32 %s50_s30, 16  ;;  %s43_s5 = sxor.u32 %s42_s3, %s41_s28  ;;  %v682_v6 = vmov 2475754826  }
  0x18   :  { %s52_s4 = sxor.u32 %s51_s0, %s50_s30  ;;  %v55_v15 = vstv %s43_s5  ;;  %p662_p7 = scmp.lt.s32.totalorder %s656_s8, %s656_s8 }
  0x19   :  { %v76_v9 = vstv %s52_s4  ;;  %v56_v20 = vadd.s32 %v55_v15, %v53_v14  ;;  %v57_v30 = vadd.s32 %v55_v15, %v54_v24 }
  0x1a   :  { %v77_v10 = vadd.s32 %v76_v9, %v74_v7  ;;  %v78_v11 = vadd.s32 %v76_v9, %v75_v8  ;;  %v683_v8 = vmov 2131351028   ;;  %p663_p8 = por %p662_p7, %p661_p6 }
  0x1b   :  { %v58_v26 = vshrl.u32 %v56_v20, 16  ;;  %v59_v36 = vshrl.u32 %v57_v30, 16 }
  0x1c   :  { %v79_v12 = vshrl.u32 %v77_v10, 16  ;;  %v80_v13 = vshrl.u32 %v78_v11, 16  ;;  %p664_p9 = pnand %p663_p8, %p657_p5 }
  0x1d   :  { %v60_v32 = vxor.u32 %v58_v26, %v56_v20  ;;  %v61_v42 = vxor.u32 %v59_v36, %v57_v30  ;;  %v685_v20 = vmov 920167782  }
  0x1e   :  { %v81_v16 = vxor.u32 %v79_v12, %v77_v10  ;;  %v82_v17 = vxor.u32 %v80_v13, %v78_v11 }
  0x1f   :  { %v62_v38 = vmul.u32 2146121005, %v60_v32  ;;  %v63_v48 = vmul.u32 2146121005, %v61_v42 }
  0x20   :  { %v83_v18 = vmul.u32 2146121005, %v81_v16  ;;  %v84_v19 = vmul.u32 2146121005, %v82_v17  ;;  %v684_v16 = vmov 2102212464  }
  0x21   :  { %v64_v44 = vshrl.u32 %v62_v38, 15  ;;  %v65_v54 = vshrl.u32 %v63_v48, 15 }
  0x22   :  { %v85_v21 = vshrl.u32 %v83_v18, 15  ;;  %v86_v22 = vshrl.u32 %v84_v19, 15 }
  0x23   :  { %v66_v49 = vxor.u32 %v64_v44, %v62_v38  ;;  %v719_v60 = vxor.u32 %v65_v54, %v63_v48 }
  0x24   :  { %v87_v23 = vxor.u32 %v85_v21, %v83_v18  ;;  %v88_v25 = vxor.u32 %v86_v22, %v84_v19 }
  0x25   :  { %v68_v55 = vmul.u32 2221713035, %v66_v49  ;;  %v69_v12 = vmul.u32 2221713035, %v719_v60 }
  0x26   :  { %v89_v27 = vmul.u32 2221713035, %v87_v23  ;;  %v90_v28 = vmul.u32 2221713035, %v88_v25 }
  0x27   :  { %v70_v61 = vshrl.u32 %v68_v55, 16 }
  0x28   :  { %v91_v29 = vshrl.u32 %v89_v27, 16  ;;  %v92_v31 = vshrl.u32 %v90_v28, 16 }
  0x29   :  { %v72_v10 = vxor.u32 %v70_v61, %v68_v55 }
  0x2a   :  { %v93_v33 = vxor.u32 %v91_v29, %v89_v27  ;;  %v94_v34 = vxor.u32 %v92_v31, %v90_v28  ;;  %v686_v28 = vmov 1326507024  }
  0x2b   :  { %v95_v27 = vshrl.u32 %v72_v10, 9 }
  0x2c   :  { %v103_v35 = vshrl.u32 %v93_v33, 9  ;;  %v104_v37 = vshrl.u32 %v94_v34, 9 }
  0x2e   :  { %v105_v39 = vor.u32 1065353216, %v103_v35  ;;  %v106_v40 = vor.u32 1065353216, %v104_v37 }
  0x30   :  { %v586_v41 = vadd.f32 -1.0, %v105_v39  ;;  %v587_v43 = vadd.f32 -1.0, %v106_v40 }
  0x32   :  { %v712_v45 = vmul.f32 6.2831855, %v586_v41  ;;  %v714_v46 = vmul.f32 6.2831855, %v587_v43  ;;  %v71_v43 = vshrl.u32 %v69_v12, 16 }
  0x34   :  { %v136_v47 = vand.u32 2139095040, %v712_v45  ;;  %v239_v50 = vand.u32 2139095040, %v714_v46  ;;  %v133_v56 = vand.u32 2147483647, %v712_v45  ;;  %v236_v13 = vand.u32 2147483647, %v714_v46 }
  0x35   :  { %vm135_vm13 = vcmp.lt.s32.totalorder %v712_v45, 0 }
  0x36   :  { %v137_v51 = vshrl.u32 %v136_v47, 23  ;;  %v240_v52 = vshrl.u32 %v239_v50, 23  ;;  %v140_v62 = vand.u32 8388607, %v133_v56  ;;  %v243_v39 = vand.u32 8388607, %v236_v13 }
  0x37   :  { %vm785_vm14 = vcmp.le.f32.partialorder %v133_v56, 0.7853982 }
  0x38   :  { %v588_v53 = vadd.s32 4294967169, %v137_v51  ;;  %v592_v57 = vadd.s32 4294967169, %v240_v52  ;;  %v141_v11 = vor.u32 8388608, %v140_v62  ;;  %v97_v51 = vor.u32 1065353216, %v95_v27 }
  0x3a   :  { %v143_v58 = vadd.s32 1, %v588_v53  ;;  %v246_v59 = vadd.s32 1, %v592_v57  ;;  %v181_v30 = vshll.u32 %v141_v11, 8 }
  0x3c   :  { %vm144_vm0 = vcmp.gt.s32.totalorder %v143_v58, 0  ;;  %vm247_vm1 = vcmp.gt.s32.totalorder %v246_v59, 0 }
  0x3d   :  { %v145_v63 = vsel %vm144_vm0, %v143_v58, 0  ;;  %v248_v2 = vsel %vm247_vm1, %v246_v59, 0  ;;  %v244_v58 = vor.u32 8388608, %v243_v39  ;;  %vm238_vm0 = vcmp.lt.s32.totalorder %v714_v46, 0 }
  0x3e   :  { %v147_v0 = vand.u32 31, %v145_v63  ;;  %v146_v1 = vshrl.u32 %v145_v63, 5  ;;  %v250_v22 = vand.u32 31, %v248_v2  ;;  %v249_v59 = vshrl.u32 %v248_v2, 5 }
  0x40   :  { %v148_v3 = vsub.s32 32, %v147_v0  ;;  %v150_v5 = vshll.u32 %v681_v4, %v147_v0  ;;  %v153_v7 = vshll.u32 %v682_v6, %v147_v0  ;;  %v156_v9 = vshll.u32 %v683_v8, %v147_v0 }
  0x41   :  { %v159_v18 = vshll.u32 %v684_v16, %v147_v0  ;;  %v162_v21 = vshll.u32 %v685_v20, %v147_v0  ;;  %vm165_vm2 = vcmp.lt.s32.totalorder %v146_v1, 1  ;;  %vm168_vm3 = vcmp.lt.s32.totalorder %v146_v1, 4 }
  0x42   :  { %v151_v14 = vshrl.u32 %v682_v6, %v148_v3  ;;  %v154_v15 = vshrl.u32 %v683_v8, %v148_v3  ;;  %v157_v17 = vshrl.u32 %v684_v16, %v148_v3  ;;  %v149_v19 = vshrl.u32 %v681_v4, %v148_v3 }
  0x43   :  { %v160_v26 = vshrl.u32 %v685_v20, %v148_v3  ;;  %v163_v29 = vshrl.u32 %v686_v28, %v148_v3  ;;  %vm166_vm4 = vcmp.lt.s32.totalorder %v146_v1, 2  ;;  %vm167_vm5 = vcmp.lt.s32.totalorder %v146_v1, 3 }
  0x44   :  { %v152_v23 = vor.u32 %v151_v14, %v150_v5  ;;  %v155_v24 = vor.u32 %v154_v15, %v153_v7  ;;  %v158_v25 = vor.u32 %v157_v17, %v156_v9  ;;  %v251_v40 = vsub.s32 32, %v250_v22 }
  0x45   :  { %v161_v31 = vor.u32 %v160_v26, %v159_v18  ;;  %v164_v33 = vor.u32 %v163_v29, %v162_v21  ;;  %v253_v44 = vshll.u32 %v681_v4, %v250_v22  ;;  %v256_v63 = vshll.u32 %v682_v6, %v250_v22 }
  0x46   :  { %v170_v32 = vsel %vm168_vm3, %v158_v25, 2102212464  ;;  %v169_v34 = vsel %vm165_vm2, %v149_v19, %v152_v23  ;;  %v173_v36 = vsel %vm165_vm2, %v152_v23, %v155_v24  ;;  %v177_v38 = vsel %vm165_vm2, %v155_v24, %v158_v25 }
  0x47   :  { %v171_v35 = vsel %vm167_vm5, %v155_v24, %v170_v32  ;;  %v174_v37 = vsel %vm168_vm3, %v161_v31, 920167782  ;;  %v178_v42 = vsel %vm168_vm3, %v164_v33, 1326507024  ;;  %v254_v50 = vshrl.u32 %v682_v6, %v251_v40 }
  0x48   :  { %v175_v41 = vsel %vm167_vm5, %v158_v25, %v174_v37  ;;  %v172_v47 = vsel %vm166_vm4, %v169_v34, %v171_v35  ;;  %v179_v49 = vsel %vm167_vm5, %v161_v31, %v178_v42  ;;  %v257_v0 = vshrl.u32 %v683_v8, %v251_v40 }
  0x49   :  { %v176_v48 = vsel %vm166_vm4, %v173_v36, %v175_v41  ;;  %v180_v52 = vsel %vm166_vm4, %v177_v38, %v179_v49  ;;  %v188_v61 = vmul.u32 %v181_v30, %v172_v47  ;;  %v255_v62 = vor.u32 %v254_v50, %v253_v44 }
  0x4a   :  { %v741_v53 = vmul.u32.u64.low %v181_v30, %v176_v48  ;;  %v742_v54 = vmul.u32.u64.high %v181_v30, %v176_v48, %v741_v53  ;;  %v745_v55 = vmul.u32.u64.low %v181_v30, %v180_v52  ;;  %v746_v57 = vmul.u32.u64.high %v181_v30, %v180_v52, %v745_v55 }
  0x4b   :  { %v259_v3 = vshll.u32 %v683_v8, %v250_v22  ;;  %v260_v5 = vshrl.u32 %v684_v16, %v251_v40  ;;  %v262_v7 = vshll.u32 %v684_v16, %v250_v22  ;;  %v263_v9 = vshrl.u32 %v685_v20, %v251_v40 }
  0x4c   :  { %v191_v1 = vadd.s32 1, %v742_v54  ;;  %v258_v10 = vor.u32 %v257_v0, %v256_v63  ;;  %v265_v11 = vshll.u32 %v685_v20, %v250_v22  ;;  %v266_v14 = vshrl.u32 %v686_v28, %v251_v40 }
  0x4d   :  { %v101_v15 = vsub.f32 2.0, %v97_v51  ;;  %vm190_vm6 = vc.u32 %v746_v57, %v741_v53  ;;  %v252_v17 = vshrl.u32 %v681_v4, %v251_v40  ;;  %v264_v2 = vor.u32 %v263_v9, %v262_v7 }
  0x4e   :  { %v192_v18 = vsel %vm190_vm6, %v191_v1, %v742_v54  ;;  %v261_v6 = vor.u32 %v260_v5, %v259_v3  ;;  %v267_v19 = vor.u32 %v266_v14, %v265_v11  ;;  %vm268_vm7 = vcmp.lt.s32.totalorder %v249_v59, 1 }
  0x4f   :  { %v193_v8 = vadd.s32 %v192_v18, %v188_v61  ;;  %vm270_vm8 = vcmp.lt.s32.totalorder %v249_v59, 3  ;;  %vm271_vm9 = vcmp.lt.s32.totalorder %v249_v59, 4  ;;  %vm269_vm10 = vcmp.lt.s32.totalorder %v249_v59, 2 }
  0x50   :  { %v273_v16 = vsel %vm271_vm9, %v261_v6, 2102212464  ;;  %v276_v21 = vsel %vm268_vm7, %v255_v62, %v258_v10  ;;  %v284_v20 = vshll.u32 %v244_v58, 8  ;;  %620 = vlog2.f32 %v101_v15 }
  0x51   :  { %v194_v22 = vadd.s32 536870912, %v193_v8  ;;  %v73_v23 = vxor.u32 %v71_v43, %v69_v12  ;;  %v277_v24 = vsel %vm271_vm9, %v264_v2, 920167782  ;;  %v272_v4 = vsel %vm268_vm7, %v252_v17, %v255_v62 }
  0x52   :  { %v278_v25 = vsel %vm270_vm8, %v261_v6, %v277_v24  ;;  %v280_v26 = vsel %vm268_vm7, %v258_v10, %v261_v6  ;;  %v281_v27 = vsel %vm271_vm9, %v267_v19, 1326507024  ;;  %v274_v29 = vsel %vm270_vm8, %v258_v10, %v273_v16 }
  0x53   :  { %v756_v28 = vshrl.u32 %v194_v22, 30  ;;  %v279_v30 = vsel %vm269_vm10, %v276_v21, %v278_v25  ;;  %v282_v31 = vsel %vm270_vm8, %v264_v2, %v281_v27  ;;  %v96_v36 = vshrl.u32 %v73_v23, 9 }
  0x54   :  { %v283_v32 = vsel %vm269_vm10, %v280_v26, %v282_v31  ;;  %v762_v33 = vmul.u32.u64.low %v284_v20, %v279_v30  ;;  %v763_v34 = vmul.u32.u64.high %v284_v20, %v279_v30, %v762_v33  ;;  %v275_v37 = vsel %vm269_vm10, %v272_v4, %v274_v29 }
  0x55   :  { %v196_v60 = vshll.u32 %v756_v28, 30  ;;  %v766_v12 = vmul.u32.u64.low %v284_v20, %v283_v32  ;;  %v767_v35 = vmul.u32.u64.high %v284_v20, %v283_v32, %v766_v12  ;;  %v291_v41 = vmul.u32 %v284_v20, %v275_v37 }
  0x56   :  { %v294_v39 = vadd.s32 1, %v763_v34  ;;  %v98_v42 = vor.u32 1065353216, %v96_v36  ;;  %v189_v54 = vadd.s32 %v741_v53, %v746_v57  ;;  %v219_v6 = vsub.s32 4, %v756_v28 }
  0x57   :  { %v197_v38 = vsub.s32 %v193_v8, %v196_v60  ;;  %vm293_vm11 = vc.u32 %v767_v35, %v762_v33  ;;  %v292_v21 = vadd.s32 %v762_v33, %v767_v35  ;;  %vm805_vm2 = vcmp.le.f32.partialorder %v236_v13, 0.7853982 }
  0x58   :  { %v295_v44 = vsel %vm293_vm11, %v294_v39, %v763_v34  ;;  %v102_v50 = vsub.f32 2.0, %v98_v42  ;;  %v220_v25 = vsel %vm135_vm13, %v219_v6, %v756_v28  ;;  %vm225_vm10 = vweird.f32 %v712_v45 }
  0x59   :  { %v199_v40 = vsub.s32 0, %v197_v38  ;;  %v296_v48 = vadd.s32 %v295_v44, %v291_v41  ;;  %v222_v30 = vsel %vm785_vm14, 0, %v220_v25 }
  0x5a   :  { %622 = vlog2.f32 %v102_v50  ;;  %v438_v28 = vadd.s32 3, %v222_v30 }
  0x5b   :  { %v589_v43 = vmin.u32 %v199_v40, %v197_v38  ;;  %v297_v52 = vadd.s32 536870912, %v296_v48 }
  0x5c   :  { %v439_v40 = vand.u32 3, %v438_v28 }
  0x5d   :  { %v201_v47 = vclz %v589_v43  ;;  %v621_v49 = vpop.eup %620  ;;  %v775_v55 = vshrl.u32 %v297_v52, 30 }
  0x5e   :  { %v114_v58 = vmul.f32 0.6931472, %v621_v49  ;;  %vm444_vm5 = vcmp.eq.s32.totalorder %v439_v40, 2  ;;  %vm441_vm7 = vcmp.eq.s32.totalorder %v439_v40, 0  ;;  %vm440_vm9 = vcmp.lt.s32.totalorder %v439_v40, 2 }
  0x5f   :  { %v590_v51 = vadd.s32 4294967294, %v201_v47  ;;  %v299_v0 = vshll.u32 %v775_v55, 30  ;;  %v322_v39 = vsub.s32 4, %v775_v55 }
  0x60   :  { %v778_v9 = vmul.f32 -2.0, %v114_v58 }
  0x61   :  { %vm591_vm12 = vcmp.lt.s32.totalorder %v590_v51, 0  ;;  %v300_v7 = vsub.s32 %v296_v48, %v299_v0  ;;  %v323_v49 = vsel %vm238_vm0, %v322_v39, %v775_v55 }
  0x62   :  { %v204_v59 = vsel %vm591_vm12, 0, %v590_v51  ;;  %624 = vrsqrt.f32 %v778_v9  ;;  %vm121_vm1 = vcmp.eq.f32.partialorder %v778_v9, inf  ;;  %vm123_vm3 = vcmp.eq.f32.partialorder %v778_v9, 0.0 }
  0x63   :  { %v205_v61 = vsub.s32 32, %v204_v59  ;;  %v206_v62 = vshll.u32 %v197_v38, %v204_v59  ;;  %v209_v63 = vsub.s32 4294967266, %v204_v59  ;;  %v302_v11 = vsub.s32 0, %v300_v7 }
  0x64   :  { %v226_v38 = vand.u32 3, %v222_v30  ;;  %v124_v44 = vand.u32 2147483648, %v778_v9  ;;  %v325_v55 = vsel %vm805_vm2, 0, %v323_v49 }
  0x65   :  { %v207_v3 = vshrl.u32 %v189_v54, %v205_v61  ;;  %v210_v5 = vadd.s32 127, %v209_v63  ;;  %v593_v14 = vmin.u32 %v302_v11, %v300_v7 }
  0x66   :  { %vm231_vm4 = vcmp.eq.s32.totalorder %v226_v38, 2  ;;  %vm228_vm6 = vcmp.eq.s32.totalorder %v226_v38, 0  ;;  %vm227_vm8 = vcmp.lt.s32.totalorder %v226_v38, 2 }
  0x67   :  { %v208_v1 = vor.u32 %v207_v3, %v206_v62  ;;  %v211_v10 = vshll.u32 %v210_v5, 23  ;;  %v304_v17 = vclz %v593_v14  ;;  %v623_v19 = vpop.eup %622 }
  0x68   :  { %v116_v56 = vmul.f32 0.6931472, %v623_v19 }
  0x69   :  { %v212_v53 = vor.u32 4788187, %v211_v10  ;;  %v215_v57 = vcvt.s32.f32 %v208_v1  ;;  %v594_v18 = vadd.s32 4294967294, %v304_v17 }
  0x6a   :  { %v796_v33 = vmul.f32 -2.0, %v116_v56 }
  0x6b   :  { %v213_v15 = vand.u32 2147483647, %v212_v53  ;;  %vm595_vm15 = vcmp.lt.s32.totalorder %v594_v18, 0  ;;  %v559_v53 = vld [vmem:[#allocation4] sm:$0xff] }
  0x6c   :  { %v307_v20 = vsel %vm595_vm15, 0, %v594_v18  ;;  %vm128_vm11 = vcmp.eq.f32.partialorder %v796_v33, inf  ;;  %vm130_vm12 = vcmp.eq.f32.partialorder %v796_v33, 0.0  ;;  %v131_v19 = vand.u32 2147483648, %v796_v33 }
  0x6d   :  { %v216_v2 = vmul.f32 %v215_v57, %v213_v15  ;;  %v308_v23 = vsub.s32 32, %v307_v20  ;;  %v309_v24 = vshll.u32 %v300_v7, %v307_v20  ;;  %v312_v4 = vsub.s32 4294967266, %v307_v20 }
  0x6e   :  { %v542_v7 = vadd.s32 3, %v325_v55  ;;  %v329_v15 = vand.u32 3, %v325_v55 }
  0x6f   :  { %v217_v16 = vxor.u32 2147483648, %v216_v2  ;;  %v310_v27 = vshrl.u32 %v292_v21, %v308_v23  ;;  %v313_v29 = vadd.s32 127, %v312_v4  ;;  %v625_v12 = vpop.eup %624 }
  0x70   :  { %v120_v36 = vmul.f32 %v625_v12, %v778_v9  ;;  %v543_v17 = vand.u32 3, %v542_v7  ;;  %vm331_vm15 = vcmp.eq.s32.totalorder %v329_v15, 0 }
  0x71   :  { %v218_v22 = vsel %vm135_vm13, %v217_v16, %v216_v2  ;;  %v311_v31 = vor.u32 %v310_v27, %v309_v24  ;;  %v314_v32 = vshll.u32 %v313_v29, 23  ;;  %vm334_vm13 = vcmp.eq.s32.totalorder %v329_v15, 2 }
  0x72   :  { %v221_v26 = vsel %vm785_vm14, %v712_v45, %v218_v22  ;;  %v122_v43 = vsel %vm121_vm1, %v778_v9, %v120_v36  ;;  %v565_v45 = vld [vmem:[#allocation4 + $0x10] sm:$0xff]  ;;  %vm548_vm14 = vcmp.eq.s32.totalorder %v543_v17, 2  ;;  %vm330_vm1 = vcmp.lt.s32.totalorder %v329_v15, 2 }
  0x73   :  { %626 = vcosq.f32 %v221_v26  ;;  %v315_v34 = vor.u32 4788187, %v314_v32  ;;  %v318_v60 = vcvt.s32.f32 %v311_v31  ;;  %v125_v59 = vsel %vm123_vm3, %v124_v44, %v122_v43  ;;  %v560_v32 = vld [vmem:[#allocation4 + $0x8] sm:$0xff] }
  0x74   :  { %628 = vsinq.f32 %v221_v26  ;;  %vm328_vm3 = vweird.f32 %v714_v46 }
  0x75   :  { %v316_v35 = vand.u32 2147483647, %v315_v34  ;;  %630 = vrsqrt.f32 %v796_v33 }
  0x77   :  { %v319_v37 = vmul.f32 %v318_v60, %v316_v35 }
  0x79   :  { %v320_v42 = vxor.u32 2147483648, %v319_v37 }
  0x7b   :  { %v321_v47 = vsel %vm238_vm0, %v320_v42, %v319_v37  ;;  %vm545_vm0 = vcmp.eq.s32.totalorder %v543_v17, 0 }
  0x7c   :  { %v324_v50 = vsel %vm805_vm2, %v714_v46, %v321_v47  ;;  %vm544_vm2 = vcmp.lt.s32.totalorder %v543_v17, 2 }
  0x7d   :  { %632 = vcosq.f32 %v324_v50 }
  0x7e   :  { %634 = vsinq.f32 %v324_v50 }
  0x80   :  { %v627_v48 = vpop.eup %626 }
  0x81   :  { %v629_v13 = vpop.eup %628  ;;  %v232_v51 = vxor.u32 2147483648, %v627_v48 }
  0x82   :  { %v229_v52 = vxor.u32 2147483648, %v629_v13  ;;  %v631_v11 = vpop.eup %630 }
  0x83   :  { %v233_v54 = vsel %vm231_vm4, %v232_v51, %v629_v13  ;;  %v446_v58 = vsel %vm444_vm5, %v232_v51, %v629_v13  ;;  %v127_v9 = vmul.f32 %v631_v11, %v796_v33 }
  0x84   :  { %v230_v61 = vsel %vm228_vm6, %v627_v48, %v229_v52  ;;  %v443_v62 = vsel %vm441_vm7, %v627_v48, %v229_v52 }
  0x85   :  { %v234_v63 = vsel %vm227_vm8, %v230_v61, %v233_v54  ;;  %v447_v0 = vsel %vm440_vm9, %v443_v62, %v446_v58  ;;  %v129_v16 = vsel %vm128_vm11, %v796_v33, %v127_v9  ;;  %v566_v33 = vld [vmem:[#allocation4 + $0x18] sm:$0xff] }
  0x86   :  { %v235_v3 = vsel %vm225_vm10, nan, %v234_v63  ;;  %v448_v5 = vsel %vm225_vm10, nan, %v447_v0  ;;  %v132_v24 = vsel %vm130_vm12, %v131_v19, %v129_v16 }
  0x87   :  { %v339_v1 = vmul.f32 %v235_v3, %v125_v59  ;;  %v553_v10 = vmul.f32 %v448_v5, %v125_v59 }
  0x89   :  { %v341_v57 = vmul.f32 0.2, %v339_v1  ;;  %v555_v14 = vmul.f32 0.2, %v553_v10 }
  0x8a   :  { %v633_v6 = vpop.eup %632 }
  0x8b   :  { %v561_v2 = vadd.f32 %v559_v53, %v341_v57  ;;  %v567_v18 = vadd.f32 %v565_v45, %v555_v14  ;;  %v635_v8 = vpop.eup %634  ;;  %v335_v21 = vxor.u32 2147483648, %v633_v6 }
  0x8c   :  { %v332_v20 = vxor.u32 2147483648, %v635_v8 }
  0x8d   :  { %563 = vst [vmem:[#allocation7] sm:$0xff] %v561_v2  ;;  %569 = vst [vmem:[#allocation7 + $0x10] sm:$0xff] %v567_v18  ;;  %v336_v22 = vsel %vm334_vm13, %v335_v21, %v635_v8  ;;  %v550_v23 = vsel %vm548_vm14, %v335_v21, %v635_v8 }
  0x8e   :  { %v333_v4 = vsel %vm331_vm15, %v633_v6, %v332_v20  ;;  %v547_v25 = vsel %vm545_vm0, %v633_v6, %v332_v20 }
  0x8f   :  { %v337_v26 = vsel %vm330_vm1, %v333_v4, %v336_v22  ;;  %v551_v56 = vsel %vm544_vm2, %v547_v25, %v550_v23 }
  0x90   :  { %v338_v27 = vsel %vm328_vm3, nan, %v337_v26  ;;  %v552_v29 = vsel %vm328_vm3, nan, %v551_v56 }
  0x91   :  { %v340_v30 = vmul.f32 %v338_v27, %v132_v24  ;;  %v554_v31 = vmul.f32 %v552_v29, %v132_v24 }
  0x93   :  { %v342_v34 = vmul.f32 0.2, %v340_v30  ;;  %v556_v60 = vmul.f32 0.2, %v554_v31 }
  0x95   :  { %v562_v12 = vadd.f32 %v560_v32, %v342_v34  ;;  %v568_v28 = vadd.f32 %v566_v33, %v556_v60 }
  0x97   :  { %564 = vst [vmem:[#allocation7 + $0x8] sm:$0xff] %v562_v12  ;;  %570 = vst [vmem:[#allocation7 + $0x18] sm:$0xff] %v568_v28 }
  0x98   :  { %667 = shalt.err (!%p664_p9)
}
  0x99   :  { %580 = dma.vmem_to_hbm [thread:$0]  %s578_s7, 512, %s832_s2, [#allocation6]  }
  0x9a   :  { %678 = dma.done.wait [#allocation6], 512  }
  0x9b   :  { %679 = vsyncadd [#allocation6], 4294966784 }
  0x9c   :  { %584 = vsyncpa [#allocation5], 1 }
  0x9d   :  { %585 = vsyncpa [#allocation6], 1 }

</bundles_post_ra>
